<compile_context>
chip_gen: v6e
topology: v6e:2x2x1
jax: 0.10.0
libtpu: 0.0.40
codegen_flags: <defaults>
</compile_context>

<pallas_src>
import functools

import jax
import jax.numpy as jnp
import numpy as np
from jax.experimental import pallas as pl
from jax.experimental.pallas import tpu as pltpu

LN_EPS = 1e-5  # torch.nn.LayerNorm default


def _round_up(a: int, m: int) -> int:
    return (a + m - 1) // m * m


def _min_rows_for(*dtypes) -> int:
    """Minimum sublane tile for the block dtypes (8 f32 / 16 bf16 / 32 int8)."""
    m = 8
    for dt in dtypes:
        sz = np.dtype(dt).itemsize
        m = max(m, {4: 8, 2: 16, 1: 32}.get(sz, 8))
    return m


def _choose_row_tile(M, target, min_rows, vmem_est, vmem_budget):
    """Pick (row_tile, padded_row_count); prefer tiles that divide M exactly."""
    target = max(min_rows, min(int(target), _round_up(M, min_rows)))
    # shrink to fit the VMEM budget
    while target > min_rows and vmem_est(target) > vmem_budget:
        target = max(min_rows, target // 2)
    target = max(min_rows, (target // min_rows) * min_rows)

    # prefer a tile that divides M exactly (no row padding -> the wrapper's
    # reshape/transpose can fuse straight into the pallas_call input DMA)
    if M % min_rows == 0:
        t = target
        while t >= min_rows:
            if M % t == 0:
                if M <= target or t * 4 >= target:
                    return t, M            # exact tiling, no padding
                break                      # dividing tile too small to amortize
            t -= min_rows
    if M <= target:
        return M, M                        # single full-array block
    # last resort: pad rows to a multiple of the tile
    return target, _round_up(M, target)


def _tokenization_kernel(x_ref, g1_ref, b1_ref, w_ref, b_ref, g2_ref, b2_ref,
                         o_ref, *, d_real: int, mm_dtype):
    """LayerNorm(patch_dim) -> Linear -> LayerNorm(model_dim) for one row tile.

    d_real: the un-padded model_dim.  The weight / bias / ln2 params may be
    zero-padded along the output axis to a lane-dense width; LN2 statistics
    are computed over the first d_real columns only (padded linear outputs
    are exactly zero, padded gamma/beta are zero, so padded outputs are 0).
    """
    x = x_ref[...].astype(jnp.float32)                       # [tm, P]

    # ---- LayerNorm over patch_dim (exact, un-padded axis) ----
    mu = jnp.mean(x, axis=-1, keepdims=True)
    xc = x - mu
    var = jnp.mean(xc * xc, axis=-1, keepdims=True)
    xn = xc * jax.lax.rsqrt(var + LN_EPS) * g1_ref[...] + b1_ref[...]

    # ---- Linear (patch_dim -> model_dim) on the MXU, f32 accumulation ----
    y = jnp.dot(xn.astype(mm_dtype), w_ref[...],
                preferred_element_type=jnp.float32) + b_ref[...]   # [tm, Dp]

    # ---- LayerNorm over model_dim (masked to the real columns) ----
    d_pad = y.shape[-1]
    if d_real == d_pad:
        mu2 = jnp.mean(y, axis=-1, keepdims=True)
        yc = y - mu2
        var2 = jnp.mean(yc * yc, axis=-1, keepdims=True)
    else:
        inv_d = 1.0 / d_real
        col = jax.lax.broadcasted_iota(jnp.int32, y.shape, 1)
        mask = (col < d_real).astype(jnp.float32)
        # padded columns of y are exactly 0 (zero-padded weight & bias)
        mu2 = jnp.sum(y, axis=-1, keepdims=True) * inv_d
        yc = (y - mu2) * mask
        var2 = jnp.sum(yc * yc, axis=-1, keepdims=True) * inv_d

    yn = yc * jax.lax.rsqrt(var2 + LN_EPS)
    o_ref[...] = (yn * g2_ref[...] + b2_ref[...]).astype(o_ref.dtype)


def vanilla_2d_tokenization(x, params, patch_size=(4, 4), tm=512,
                            matmul_dtype=jnp.bfloat16, stream_dtype=None,
                            out_dtype=None):
    """x: [B, C, H, W] -> tokens [B, N, model_dim]."""
    p1, p2 = patch_size
    B, C, H, W = x.shape
    assert H % p1 == 0 and W % p2 == 0
    nh, nw = H // p1, W // p2
    N = nh * nw
    P = p1 * p2 * C

    w = params["w"]                                           # [P, D]
    D = int(w.shape[1])
    D_pad = _round_up(D, 128)                                 # lane-dense output
    M = B * N

    in_dtype = jnp.dtype(stream_dtype) if stream_dtype is not None else x.dtype
    o_dtype = jnp.dtype(out_dtype) if out_dtype is not None else x.dtype
    in_bytes = np.dtype(in_dtype).itemsize
    out_bytes = np.dtype(o_dtype).itemsize
    w_bytes = np.dtype(matmul_dtype).itemsize

    # ---- generation-aware VMEM budget (v5e/v6e: 128 MiB, v7x: 64 MiB/TC) ----
    try:
        vmem_cap = int(pltpu.get_tpu_info().vmem_capacity_bytes)
    except Exception:
        vmem_cap = 64 * 1024 * 1024        # conservative (v7x per-TC) fallback
    vmem_budget = (3 * vmem_cap) // 4

    def vmem_est(t):
        stream = 2 * t * P * in_bytes + 2 * t * D_pad * out_bytes  # dbl-buffered I/O
        weight = 2 * P * D_pad * w_bytes                           # resident weight
        small = 2 * (2 * P + 3 * D_pad) * 4                        # gammas/betas/bias
        interm = 3 * t * max(P, D_pad) * 4                         # in-kernel f32 temps
        return stream + weight + small + interm

    min_rows = _min_rows_for(in_dtype, o_dtype)
    tm_eff, M_pad = _choose_row_tile(M, tm, min_rows, vmem_est, vmem_budget)

    # --- glue: image -> patches, feature order (p1, p2, c).  Pure reshape/
    #     transpose chain so XLA may fuse it into the pallas_call input DMA. ---
    patches = x.reshape(B, C, nh, p1, nw, p2)
    patches = patches.transpose(0, 2, 4, 3, 5, 1)             # [B, nh, nw, p1, p2, C]
    patches = patches.reshape(M, P)
    if patches.dtype != in_dtype:
        patches = patches.astype(in_dtype)
    if M_pad != M:
        # TODO(synk): this pad re-materializes the [M, P] patch tensor in HBM
        # (defeats input fusion); only reached when M has no usable row-tile
        # divisor.  A ragged-last-tile row mask in-kernel would remove it.
        patches = jnp.pad(patches, ((0, M_pad - M), (0, 0)))

    # --- params: cast weight once for the MXU, pad the output axis to D_pad ---
    w_p = w.astype(matmul_dtype)
    bias = params["b"].astype(jnp.float32)
    g2 = params["ln2_g"].astype(jnp.float32)
    b2 = params["ln2_b"].astype(jnp.float32)
    if D_pad != D:
        w_p = jnp.pad(w_p, ((0, 0), (0, D_pad - D)))
        bias = jnp.pad(bias, (0, D_pad - D))
        g2 = jnp.pad(g2, (0, D_pad - D))
        b2 = jnp.pad(b2, (0, D_pad - D))
    g1 = params["ln1_g"].astype(jnp.float32).reshape(1, P)
    b1 = params["ln1_b"].astype(jnp.float32).reshape(1, P)
    bias = bias.reshape(1, D_pad)
    g2 = g2.reshape(1, D_pad)
    b2 = b2.reshape(1, D_pad)

    grid = (M_pad // tm_eff,)

    cost = pl.CostEstimate(
        flops=2 * M_pad * P * D_pad + 10 * M_pad * (P + D_pad),
        transcendentals=2 * M_pad,
        bytes_accessed=(M_pad * P * in_bytes + M_pad * D_pad * out_bytes
                        + P * D_pad * w_bytes),
    )

    kernel = functools.partial(_tokenization_kernel, d_real=D,
                               mm_dtype=matmul_dtype)

    # vmem_est already counts double buffering -> 1.3x safety factor, capped
    # below the physical VMEM of the current generation (minus headroom).
    vmem_limit = int(min(max(int(1.3 * vmem_est(tm_eff)), 32 * 1024 * 1024),
                         vmem_cap - 8 * 1024 * 1024))

    out = pl.pallas_call(
        kernel,
        out_shape=jax.ShapeDtypeStruct((M_pad, D_pad), o_dtype),
        grid_spec=pltpu.PrefetchScalarGridSpec(
            num_scalar_prefetch=0,
            grid=grid,
            in_specs=[
                pl.BlockSpec((tm_eff, P), lambda i: (i, 0)),    # patch rows
                pl.BlockSpec((1, P), lambda i: (0, 0)),         # ln1 gamma
                pl.BlockSpec((1, P), lambda i: (0, 0)),         # ln1 beta
                pl.BlockSpec((P, D_pad), lambda i: (0, 0)),     # linear weight (resident)
                pl.BlockSpec((1, D_pad), lambda i: (0, 0)),     # linear bias
                pl.BlockSpec((1, D_pad), lambda i: (0, 0)),     # ln2 gamma
                pl.BlockSpec((1, D_pad), lambda i: (0, 0)),     # ln2 beta
            ],
            out_specs=pl.BlockSpec((tm_eff, D_pad), lambda i: (i, 0)),
        ),
        compiler_params=pltpu.CompilerParams(
            dimension_semantics=("parallel",),
            vmem_limit_bytes=vmem_limit,
            # let XLA fuse the patch-extraction reshape/transpose into the
            # first (patches) operand instead of a separate HBM round-trip
            allow_input_fusion=[True, False, False, False, False, False, False],
        ),
        cost_estimate=cost,
    )(patches, g1, b1, w_p, bias, g2, b2)

    return out[:M, :D].reshape(B, N, D)


def init_params(key, channel_size, model_dim, patch_size):
    p1, p2 = patch_size
    patch_dim = p1 * p2 * channel_size
    k_w, k_b = jax.random.split(key, 2)
    return {
        "ln1_g": jnp.ones((patch_dim,), jnp.float32),
        "ln1_b": jnp.zeros((patch_dim,), jnp.float32),
        "w": (jax.random.normal(k_w, (patch_dim, model_dim), jnp.float32)
              / jnp.sqrt(patch_dim)),
        "b": jax.random.normal(k_b, (model_dim,), jnp.float32) * 0.01,
        "ln2_g": jnp.ones((model_dim,), jnp.float32),
        "ln2_b": jnp.zeros((model_dim,), jnp.float32),
    }


if __name__ == "__main__":
    key = jax.random.PRNGKey(0)
    k_x, k_p = jax.random.split(key)

    B, C, H, W = 2, 4, 16, 16
    patch_size = (4, 4)
    model_dim = 32

    x = jax.random.normal(k_x, (B, C, H, W), jnp.float32)
    params = init_params(k_p, C, model_dim, patch_size)

    out = vanilla_2d_tokenization(x, params, patch_size=patch_size)
    out = jax.block_until_ready(out)

    # reference check in plain JAX (same patch ordering, same bf16 matmul path)
    p1, p2 = patch_size
    nh, nw = H // p1, W // p2
    ref_p = x.reshape(B, C, nh, p1, nw, p2).transpose(0, 2, 4, 3, 5, 1)
    ref_p = ref_p.reshape(B, nh * nw, p1 * p2 * C)

    def ln(v, g, b):
        mu = v.mean(-1, keepdims=True)
        var = ((v - mu) ** 2).mean(-1, keepdims=True)
        return (v - mu) * jax.lax.rsqrt(var + LN_EPS) * g + b

    ref = ln(ref_p, params["ln1_g"], params["ln1_b"])
    ref = jnp.dot(ref.astype(jnp.bfloat16), params["w"].astype(jnp.bfloat16),
                  preferred_element_type=jnp.float32) + params["b"]
    ref = ln(ref, params["ln2_g"], params["ln2_b"])

    assert out.shape == (B, nh * nw, model_dim)
    assert jnp.allclose(out, ref, atol=2e-3, rtol=2e-3)
    print("KERNEL_OK")
</pallas_src>

<mosaic_0001>
module attributes {stable_mosaic.version = 11 : i64} {
  func.func @_tokenization_kernel(%arg0: i32, %arg1: memref<32x64xf32, #tpu.memory_space<vmem>>, %arg2: memref<1x64xf32, #tpu.memory_space<vmem>>, %arg3: memref<1x64xf32, #tpu.memory_space<vmem>>, %arg4: memref<64x128xbf16, #tpu.memory_space<vmem>>, %arg5: memref<1x128xf32, #tpu.memory_space<vmem>>, %arg6: memref<1x128xf32, #tpu.memory_space<vmem>>, %arg7: memref<1x128xf32, #tpu.memory_space<vmem>>, %arg8: memref<32x128xf32, #tpu.memory_space<vmem>>) attributes {dimension_semantics = [#tpu.dimension_semantics<parallel>], iteration_bounds = array<i64: 1>, scalar_prefetch = 0 : i64, scratch_operands = 0 : i64, tpu.core_type = #tpu.core_type<tc>, window_params = [{transform_indices = @transform_0, window_bounds = array<i64: 32, 64>}, {pipeline_mode = #tpu.pipeline_mode<synchronous>, transform_indices = @transform_1, window_bounds = array<i64: 1, 64>}, {pipeline_mode = #tpu.pipeline_mode<synchronous>, transform_indices = @transform_2, window_bounds = array<i64: 1, 64>}, {pipeline_mode = #tpu.pipeline_mode<synchronous>, transform_indices = @transform_3, window_bounds = array<i64: 64, 128>}, {pipeline_mode = #tpu.pipeline_mode<synchronous>, transform_indices = @transform_4, window_bounds = array<i64: 1, 128>}, {pipeline_mode = #tpu.pipeline_mode<synchronous>, transform_indices = @transform_5, window_bounds = array<i64: 1, 128>}, {pipeline_mode = #tpu.pipeline_mode<synchronous>, transform_indices = @transform_6, window_bounds = array<i64: 1, 128>}, {transform_indices = @transform_7, window_bounds = array<i64: 32, 128>}]} {
    %c0 = arith.constant 0 : index
    %c0_0 = arith.constant 0 : index
    %0 = vector.load %arg1[%c0, %c0_0] : memref<32x64xf32, #tpu.memory_space<vmem>>, vector<32x64xf32>
    %cst = arith.constant dense<0.000000e+00> : vector<32xf32>
    %1 = vector.multi_reduction <add>, %0, %cst [1] : vector<32x64xf32> to vector<32xf32>
    %2 = vector.shape_cast %1 : vector<32xf32> to vector<32x1xf32>
    %cst_1 = arith.constant 6.400000e+01 : f32
    %3 = vector.broadcast %cst_1 : f32 to vector<32x1xf32>
    %4 = arith.divf %2, %3 : vector<32x1xf32>
    %5 = vector.broadcast %4 : vector<32x1xf32> to vector<32x64xf32>
    %6 = arith.subf %0, %5 : vector<32x64xf32>
    %7 = arith.mulf %6, %6 : vector<32x64xf32>
    %cst_2 = arith.constant dense<0.000000e+00> : vector<32xf32>
    %8 = vector.multi_reduction <add>, %7, %cst_2 [1] : vector<32x64xf32> to vector<32xf32>
    %9 = vector.shape_cast %8 : vector<32xf32> to vector<32x1xf32>
    %cst_3 = arith.constant 6.400000e+01 : f32
    %10 = vector.broadcast %cst_3 : f32 to vector<32x1xf32>
    %11 = arith.divf %9, %10 : vector<32x1xf32>
    %cst_4 = arith.constant 9.99999974E-6 : f32
    %12 = vector.broadcast %cst_4 : f32 to vector<32x1xf32>
    %13 = arith.addf %11, %12 : vector<32x1xf32>
    %14 = math.rsqrt %13 : vector<32x1xf32>
    %15 = vector.broadcast %14 : vector<32x1xf32> to vector<32x64xf32>
    %16 = arith.mulf %6, %15 : vector<32x64xf32>
    %c0_5 = arith.constant 0 : index
    %c0_6 = arith.constant 0 : index
    %17 = vector.load %arg2[%c0_5, %c0_6] : memref<1x64xf32, #tpu.memory_space<vmem>>, vector<1x64xf32>
    %18 = vector.broadcast %17 : vector<1x64xf32> to vector<32x64xf32>
    %19 = arith.mulf %16, %18 : vector<32x64xf32>
    %c0_7 = arith.constant 0 : index
    %c0_8 = arith.constant 0 : index
    %20 = vector.load %arg3[%c0_7, %c0_8] : memref<1x64xf32, #tpu.memory_space<vmem>>, vector<1x64xf32>
    %21 = vector.broadcast %20 : vector<1x64xf32> to vector<32x64xf32>
    %22 = arith.addf %19, %21 : vector<32x64xf32>
    %23 = arith.truncf %22 : vector<32x64xf32> to vector<32x64xbf16>
    %c0_9 = arith.constant 0 : index
    %c0_10 = arith.constant 0 : index
    %24 = vector.load %arg4[%c0_9, %c0_10] : memref<64x128xbf16, #tpu.memory_space<vmem>>, vector<64x128xbf16>
    %cst_11 = arith.constant dense<0.000000e+00> : vector<32x128xf32>
    %25 = tpu.matmul %23, %24, %cst_11 {dimension_numbers = #tpu.dot_dimension_numbers<[1], [0], [0], [1], [0, 0, 1, 1], [], []>} : vector<32x64xbf16>, vector<64x128xbf16>, vector<32x128xf32> -> vector<32x128xf32>
    %c0_12 = arith.constant 0 : index
    %c0_13 = arith.constant 0 : index
    %26 = vector.load %arg5[%c0_12, %c0_13] : memref<1x128xf32, #tpu.memory_space<vmem>>, vector<1x128xf32>
    %27 = vector.broadcast %26 : vector<1x128xf32> to vector<32x128xf32>
    %28 = arith.addf %25, %27 : vector<32x128xf32>
    %29 = tpu.iota {dimensions = array<i32: 1>} : vector<32x128xi32>
    %c32_i32 = arith.constant 32 : i32
    %30 = vector.broadcast %c32_i32 : i32 to vector<32x128xi32>
    %31 = arith.cmpi slt, %29, %30 : vector<32x128xi32>
    %32 = arith.extui %31 : vector<32x128xi1> to vector<32x128xi32>
    %33 = arith.sitofp %32 : vector<32x128xi32> to vector<32x128xf32>
    %cst_14 = arith.constant dense<0.000000e+00> : vector<32xf32>
    %34 = vector.multi_reduction <add>, %28, %cst_14 [1] : vector<32x128xf32> to vector<32xf32>
    %35 = vector.shape_cast %34 : vector<32xf32> to vector<32x1xf32>
    %cst_15 = arith.constant 3.125000e-02 : f32
    %36 = vector.broadcast %cst_15 : f32 to vector<32x1xf32>
    %37 = arith.mulf %35, %36 : vector<32x1xf32>
    %38 = vector.broadcast %37 : vector<32x1xf32> to vector<32x128xf32>
    %39 = arith.subf %28, %38 : vector<32x128xf32>
    %40 = arith.mulf %39, %33 : vector<32x128xf32>
    %41 = arith.mulf %40, %40 : vector<32x128xf32>
    %cst_16 = arith.constant dense<0.000000e+00> : vector<32xf32>
    %42 = vector.multi_reduction <add>, %41, %cst_16 [1] : vector<32x128xf32> to vector<32xf32>
    %43 = vector.shape_cast %42 : vector<32xf32> to vector<32x1xf32>
    %cst_17 = arith.constant 3.125000e-02 : f32
    %44 = vector.broadcast %cst_17 : f32 to vector<32x1xf32>
    %45 = arith.mulf %43, %44 : vector<32x1xf32>
    %cst_18 = arith.constant 9.99999974E-6 : f32
    %46 = vector.broadcast %cst_18 : f32 to vector<32x1xf32>
    %47 = arith.addf %45, %46 : vector<32x1xf32>
    %48 = math.rsqrt %47 : vector<32x1xf32>
    %49 = vector.broadcast %48 : vector<32x1xf32> to vector<32x128xf32>
    %50 = arith.mulf %40, %49 : vector<32x128xf32>
    %c0_19 = arith.constant 0 : index
    %c0_20 = arith.constant 0 : index
    %51 = vector.load %arg6[%c0_19, %c0_20] : memref<1x128xf32, #tpu.memory_space<vmem>>, vector<1x128xf32>
    %52 = vector.broadcast %51 : vector<1x128xf32> to vector<32x128xf32>
    %53 = arith.mulf %50, %52 : vector<32x128xf32>
    %c0_21 = arith.constant 0 : index
    %c0_22 = arith.constant 0 : index
    %54 = vector.load %arg7[%c0_21, %c0_22] : memref<1x128xf32, #tpu.memory_space<vmem>>, vector<1x128xf32>
    %55 = vector.broadcast %54 : vector<1x128xf32> to vector<32x128xf32>
    %56 = arith.addf %53, %55 : vector<32x128xf32>
    %c0_23 = arith.constant 0 : index
    %c0_24 = arith.constant 0 : index
    %57 = vector.load %arg8[%c0_23, %c0_24] : memref<32x128xf32, #tpu.memory_space<vmem>>, vector<32x128xf32>
    tpu.vector_store %arg8[%c0_23, %c0_24], %56 {strides = array<i32>} : memref<32x128xf32, #tpu.memory_space<vmem>>, vector<32x128xf32>,
    return
  }
  func.func @transform_0(%arg0: i32) -> (i32, i32) {
    %c0_i32 = arith.constant 0 : i32
    %c0_i32_0 = arith.constant 0 : i32
    return %arg0, %c0_i32 : i32, i32
  }
  func.func @transform_1(%arg0: i32) -> (i32, i32) {
    %c0_i32 = arith.constant 0 : i32
    %c0_i32_0 = arith.constant 0 : i32
    %c0_i32_1 = arith.constant 0 : i32
    return %c0_i32, %c0_i32_0 : i32, i32
  }
  func.func @transform_2(%arg0: i32) -> (i32, i32) {
    %c0_i32 = arith.constant 0 : i32
    %c0_i32_0 = arith.constant 0 : i32
    %c0_i32_1 = arith.constant 0 : i32
    return %c0_i32, %c0_i32_0 : i32, i32
  }
  func.func @transform_3(%arg0: i32) -> (i32, i32) {
    %c0_i32 = arith.constant 0 : i32
    %c0_i32_0 = arith.constant 0 : i32
    %c0_i32_1 = arith.constant 0 : i32
    return %c0_i32, %c0_i32_0 : i32, i32
  }
  func.func @transform_4(%arg0: i32) -> (i32, i32) {
    %c0_i32 = arith.constant 0 : i32
    %c0_i32_0 = arith.constant 0 : i32
    %c0_i32_1 = arith.constant 0 : i32
    return %c0_i32, %c0_i32_0 : i32, i32
  }
  func.func @transform_5(%arg0: i32) -> (i32, i32) {
    %c0_i32 = arith.constant 0 : i32
    %c0_i32_0 = arith.constant 0 : i32
    %c0_i32_1 = arith.constant 0 : i32
    return %c0_i32, %c0_i32_0 : i32, i32
  }
  func.func @transform_6(%arg0: i32) -> (i32, i32) {
    %c0_i32 = arith.constant 0 : i32
    %c0_i32_0 = arith.constant 0 : i32
    %c0_i32_1 = arith.constant 0 : i32
    return %c0_i32, %c0_i32_0 : i32, i32
  }
  func.func @transform_7(%arg0: i32) -> (i32, i32) {
    %c0_i32 = arith.constant 0 : i32
    %c0_i32_0 = arith.constant 0 : i32
    return %arg0, %c0_i32 : i32, i32
  }
}

</mosaic_0001>

<bundles_post_ra>
// kernel: tpu_custom_call.1
= control target key start
LH: loop header
LB: loop body
LE: loop exit
PB: predicated region body
PF: predicated region fallthrough
CT: control target
= control target key end

     0   :  { %12 = vsyncpa [#allocation3], 0  ;;  %s541_s0 = inlined_call_operand.hbm [shape: f32[32,64], index: 0, kind: input, shape index: {}]   ;;  %s542_s1 = inlined_call_operand.vmem [shape: f32[1,64], index: 1, kind: input, shape index: {}]   ;;  %s543_s2 = inlined_call_operand.vmem [shape: f32[1,64], index: 2, kind: input, shape index: {}]   ;;  %s544_s3 = inlined_call_operand.hbm [shape: bf16[64,128], index: 3, kind: input, shape index: {}]   ;;  %s545_s4 = inlined_call_operand.vmem [shape: f32[1,128], index: 4, kind: input, shape index: {}]   ;;  %s546_s5 = inlined_call_operand.vmem [shape: f32[1,128], index: 5, kind: input, shape index: {}]   ;;  %s547_s6 = inlined_call_operand.vmem [shape: f32[1,128], index: 6, kind: input, shape index: {}]   ;;  %s548_s7 = inlined_call_operand.hbm [shape: f32[32,128], index: 7, kind: output, shape index: {}]  }
   0x1   :  { %13 = vsyncpa [#allocation6], 0 }
   0x2   :  { %14 = vsyncpa [#allocation4], 0  ;;  %s453_s24 = smov [#allocation2]  }
   0x3   :  { %s20_s25 = sshll.u32 %s453_s24, 4  ;;  %s21_s25 = int_to_ptr.vmem [resolvable:$true] %s20_s25 }
   0x4   :  { %s395_s26 = scalar_lea.vmem %s21_s25, 512  ;;  %p400_p1 = scmp.lt.s32.totalorder %s21_s25, %s21_s25 }
   0x5   :  { %p396_p0 = scmp.ne.s32.totalorder %s21_s25, %s395_s26  ;;  %p401_p2 = scmp.lt.s32.totalorder %s395_s26, %s395_s26 }
   0x7   :  { %p402_p3 = por %p401_p2, %p400_p1 }
   0x9   :  { %p403_p4 = pnand %p402_p3, %p396_p0 }
   0xb   :  { %406 = shalt.err (!%p403_p4)
}
   0xc   :  { %s454_s27 = smov 128   ;;  %s455_s28 = smov 8  }
   0xd   :  { %26 = dma.hbm_to_vmem [thread:$0]  %s541_s0, 512, %s21_s25, [#allocation3], %s454_s27, %s454_s27, %s455_s28  }
   0xe   :  { %s456_s8 = smov [#allocation5]  }
   0xf   :  { %s36_s9 = sshll.u32 %s456_s8, 4  ;;  %s37_s9 = int_to_ptr.vmem [resolvable:$true] %s36_s9 }
  0x10   :  { %s415_s10 = scalar_lea.vmem %s37_s9, 512  ;;  %p420_p6 = scmp.lt.s32.totalorder %s37_s9, %s37_s9 }
  0x11   :  { %p416_p5 = scmp.ne.s32.totalorder %s37_s9, %s415_s10  ;;  %p421_p7 = scmp.lt.s32.totalorder %s415_s10, %s415_s10 }
  0x13   :  { %p422_p8 = por %p421_p7, %p420_p6 }
  0x15   :  { %p423_p9 = pnand %p422_p8, %p416_p5 }
  0x17   :  { %426 = shalt.err (!%p423_p9)
}
  0x18   :  { %s457_s11 = smov 64   ;;  %s458_s12 = smov 4  }
  0x19   :  { %42 = dma.hbm_to_vmem [thread:$0]  %s544_s3, 512, %s37_s9, [#allocation6], %s457_s11, %s457_s11, %s458_s12  }
  0x1a   :  { %447 = dma.done.wait [#allocation3], 512  }
  0x1b   :  { %448 = vsyncadd [#allocation3], 4294966784 }
  0x1c   :  { %449 = dma.done.wait [#allocation6], 512  }
  0x1d   :  { %450 = vsyncadd [#allocation6], 4294966784  ;;  %vm60_vm0 = vcmask 523264   ;;  %v56_v0 = vld [vmem:[#allocation2] sm:$0xff]  ;;  %v58_v1 = vld [vmem:[#allocation2 + $0x10] sm:$0xff]  ;;  %s460_s20 = smov [#allocation7]  }
  0x1e   :  { %v57_v2 = vld [vmem:[#allocation2 + $0x8] sm:$0xff]  ;;  %v61_v3 = vsel %vm60_vm0, %v56_v0, 0.0  ;;  %v67_v4 = vsel %vm60_vm0, %v58_v1, 0.0  ;;  %v59_v5 = vld [vmem:[#allocation2 + $0x18] sm:$0xff]  ;;  %v368_v29 = vld [vmem:[#allocation5 + $0x10] sm:$0xff]  }
  0x1f   :  { %62 = vadd.xlane.f32.xlu0 %v61_v3  ;;  %68 = vadd.xlane.f32.xlu1 %v67_v4  ;;  %v64_v6 = vsel %vm60_vm0, %v57_v2, 0.0  ;;  %v70_v7 = vsel %vm60_vm0, %v59_v5, 0.0  ;;  %v367_v28 = vld [vmem:[#allocation5 + $0x18] sm:$0xff]   ;;  %v369_v30 = vld [vmem:[#allocation5 + $0x8] sm:$0xff]   ;;  %v370_v31 = vld [vmem:[#allocation5] sm:$0xff]  }
  0x20   :  { %347 = vmatprep.subr.bf16.mxu0 %v367_v28  ;;  %v329_v46 = vld [vmem:[%s542_s1] ss:$0 sm:$0xff] }
  0x21   :  { %348 = vmatpush3.bf16.msra.mxu0 %v367_v28  ;;  %v330_v51 = vld [vmem:[%s543_s2] ss:$0 sm:$0xff] }
  0x22   :  { %349 = vmatprep.subr.bf16.mxu0 %v368_v29 }
  0x23   :  { %65 = vadd.xlane.f32.xlu0 %v64_v6  ;;  %71 = vadd.xlane.f32.xlu1 %v70_v7 }
  0x25   :  { %350 = vmatpush3.bf16.msra.mxu0 %v368_v29 }
  0x26   :  { %351 = vmatprep.subr.bf16.mxu0 %v369_v30 }
  0x29   :  { %352 = vmatpush3.bf16.msra.mxu0 %v369_v30 }
  0x2a   :  { %353 = vmatprep.subr.bf16.mxu0 %v370_v31 }
  0x2d   :  { %354 = vmatpush3.bf16.msra.mxu0 %v370_v31 }
  0xa8   :  { %v63_v8 = vpop.xlane.xlu0 %62  ;;  %v69_v9 = vpop.xlane.xlu1 %68 }
  0xa9   :  { %v74_v10 = vmul.f32 0.015625, %v63_v8  ;;  %v76_v11 = vmul.f32 0.015625, %v69_v9  ;;  %v232_v9 = vlaneseq }
  0xab   :  { %v78_v12 = vsub.f32 %v56_v0, %v74_v10  ;;  %v80_v13 = vsub.f32 %v58_v1, %v76_v11  ;;  %v331_v1 = vld [vmem:[%s545_s4] ss:$0 sm:$0xff]  ;;  %v233_v10 = vand.u32 127, %v232_v9 }
  0xac   :  { %v66_v14 = vpop.xlane.xlu0 %65  ;;  %v72_v15 = vpop.xlane.xlu1 %71 }
  0xad   :  { %v75_v16 = vmul.f32 0.015625, %v66_v14  ;;  %v77_v17 = vmul.f32 0.015625, %v72_v15  ;;  %v82_v18 = vmul.f32 %v78_v12, %v78_v12  ;;  %v84_v19 = vmul.f32 %v80_v13, %v80_v13 }
  0xae   :  { %vm234_vm1 = vcmp.lt.s32.totalorder %v233_v10, 32 }
  0xaf   :  { %v79_v20 = vsub.f32 %v57_v2, %v75_v16  ;;  %v81_v21 = vsub.f32 %v59_v5, %v77_v17  ;;  %v86_v22 = vsel %vm60_vm0, %v82_v18, 0.0  ;;  %v92_v23 = vsel %vm60_vm0, %v84_v19, 0.0 }
  0xb0   :  { %87 = vadd.xlane.f32.xlu0 %v86_v22 }
  0xb1   :  { %v83_v24 = vmul.f32 %v79_v20, %v79_v20  ;;  %v85_v25 = vmul.f32 %v81_v21, %v81_v21 }
  0xb3   :  { %v89_v26 = vsel %vm60_vm0, %v83_v24, 0.0  ;;  %v95_v27 = vsel %vm60_vm0, %v85_v25, 0.0 }
  0xb4   :  { %93 = vadd.xlane.f32.xlu0 %v92_v23  ;;  %90 = vadd.xlane.f32.xlu1 %v89_v26 }
  0xb8   :  { %96 = vadd.xlane.f32.xlu1 %v95_v27 }
 0x139   :  { %v88_v32 = vpop.xlane.xlu0 %87 }
 0x13a   :  { %v98_v33 = vmul.f32 0.015625, %v88_v32 }
 0x13c   :  { %v102_v34 = vadd.f32 1e-05, %v98_v33 }
 0x13d   :  { %v91_v35 = vpop.xlane.xlu1 %90  ;;  %v94_v36 = vpop.xlane.xlu0 %93 }
 0x13e   :  { %371 = vrsqrt.f32 %v102_v34  ;;  %v99_v37 = vmul.f32 0.015625, %v91_v35  ;;  %v100_v38 = vmul.f32 0.015625, %v94_v36 }
 0x140   :  { %v103_v39 = vadd.f32 1e-05, %v99_v37  ;;  %v104_v40 = vadd.f32 1e-05, %v100_v38 }
 0x141   :  { %v97_v41 = vpop.xlane.xlu1 %96 }
 0x142   :  { %373 = vrsqrt.f32 %v103_v39  ;;  %v101_v42 = vmul.f32 0.015625, %v97_v41 }
 0x143   :  { %375 = vrsqrt.f32 %v104_v40 }
 0x144   :  { %v105_v43 = vadd.f32 1e-05, %v101_v42 }
 0x146   :  { %377 = vrsqrt.f32 %v105_v43 }
 0x14b   :  { %v372_v44 = vpop.eup %371 }
 0x14c   :  { %v110_v45 = vmul.f32 %v372_v44, %v78_v12 }
 0x14e   :  { %v121_v50 = vmul.f32 %v329_v46, %v110_v45 }
 0x14f   :  { %v374_v47 = vpop.eup %373 }
 0x150   :  { %v376_v48 = vpop.eup %375  ;;  %v111_v49 = vmul.f32 %v374_v47, %v79_v20  ;;  %v132_v55 = vadd.f32 %v330_v51, %v121_v50 }
 0x151   :  { %v112_v52 = vmul.f32 %v376_v48, %v80_v13  ;;  %v459_v13 = vmov 0.0   ;;  %v340_v48 = vld [vmem:[%s547_s6] ss:$0 sm:$0xff] }
 0x152   :  { %v122_v53 = vmul.f32 %v329_v46, %v111_v49  ;;  %v338_v14 = vsel %vm234_vm1, 1.0, %v459_v13 }
 0x153   :  { %v378_v54 = vpop.eup %377  ;;  %v123_v58 = vmul.f32 %v329_v46, %v112_v52 }
 0x154   :  { %v133_v56 = vadd.f32 %v330_v51, %v122_v53  ;;  %v113_v57 = vmul.f32 %v378_v54, %v81_v21 }
 0x155   :  { %v134_v61 = vadd.f32 %v330_v51, %v123_v58 }
 0x156   :  { %v136_v59 = vpack.c.bf16 %v133_v56, %v132_v55  ;;  %v124_v60 = vmul.f32 %v329_v46, %v113_v57  ;;  %v339_v46 = vld [vmem:[%s546_s5] ss:$0 sm:$0xff]  ;;  %s316_s5 = sshll.u32 %s460_s20, 4  ;;  %s317_s5 = int_to_ptr.vmem [resolvable:$true] %s316_s5 }
 0x157   :  { %s427_s6 = scalar_lea.vmem %s317_s5, 512  ;;  %p432_p11 = scmp.lt.s32.totalorder %s317_s5, %s317_s5 }
 0x158   :  { %355 = vmatprep.mubr.msk.bf16.mxu0 %vm60_vm0, %v136_v59  ;;  %v135_v62 = vadd.f32 %v330_v51, %v124_v60  ;;  %p428_p10 = scmp.ne.s32.totalorder %s317_s5, %s427_s6  ;;  %p433_p12 = scmp.lt.s32.totalorder %s427_s6, %s427_s6 }
 0x15a   :  { %v137_v63 = vpack.c.bf16 %v135_v62, %v134_v61  ;;  %p434_p13 = por %p433_p12, %p432_p11 }
 0x15c   :  { %356 = vmatmul.mubr.msk.bf16.vlgmr.msra.gmra.mxu0 %vm60_vm0, %v137_v63  ;;  %p435_p0 = pnand %p434_p13, %p428_p10 }
 0x21c   :  { %v357_v0 = vpop.f32.mrf.mxu0 }
 0x21d   :  { %v226_v6 = vadd.f32 %v357_v0, %v331_v1 }
 0x21e   :  { %v217_v2 = vpop.f32.mrf.mxu0 }
 0x21f   :  { %v218_v3 = vadd.f32 %v331_v1, %v217_v2 }
 0x220   :  { %v358_v4 = vpop.f32.mrf.mxu0 }
 0x221   :  { %237 = vadd.xlane.f32.xlu0 %v218_v3  ;;  %v229_v8 = vadd.f32 %v358_v4, %v331_v1 }
 0x222   :  { %v220_v5 = vpop.f32.mrf.mxu0 }
 0x223   :  { %v221_v7 = vadd.f32 %v331_v1, %v220_v5 }
 0x225   :  { %239 = vadd.xlane.f32.xlu1 %v221_v7  ;;  %241 = vadd.xlane.f32.xlu0 %v226_v6 }
 0x229   :  { %243 = vadd.xlane.f32.xlu1 %v229_v8 }
 0x2aa   :  { %v238_v11 = vpop.xlane.xlu0 %237 }
 0x2ab   :  { %v245_v12 = vmul.f32 0.03125, %v238_v11 }
 0x2ad   :  { %v249_v15 = vsub.f32 %v218_v3, %v245_v12 }
 0x2ae   :  { %v240_v16 = vpop.xlane.xlu1 %239  ;;  %v242_v17 = vpop.xlane.xlu0 %241 }
 0x2af   :  { %v246_v18 = vmul.f32 0.03125, %v240_v16  ;;  %v247_v19 = vmul.f32 0.03125, %v242_v17  ;;  %v253_v20 = vmul.f32 %v338_v14, %v249_v15 }
 0x2b1   :  { %v250_v21 = vsub.f32 %v221_v7, %v246_v18  ;;  %v251_v22 = vsub.f32 %v226_v6, %v247_v19  ;;  %v257_v23 = vmul.f32 %v253_v20, %v253_v20 }
 0x2b2   :  { %v244_v24 = vpop.xlane.xlu1 %243 }
 0x2b3   :  { %v248_v25 = vmul.f32 0.03125, %v244_v24  ;;  %261 = vadd.xlane.f32.xlu0 %v257_v23  ;;  %v254_v26 = vmul.f32 %v338_v14, %v250_v21  ;;  %v255_v27 = vmul.f32 %v338_v14, %v251_v22 }
 0x2b5   :  { %v252_v28 = vsub.f32 %v229_v8, %v248_v25  ;;  %v258_v29 = vmul.f32 %v254_v26, %v254_v26  ;;  %v259_v30 = vmul.f32 %v255_v27, %v255_v27 }
 0x2b7   :  { %263 = vadd.xlane.f32.xlu1 %v258_v29  ;;  %265 = vadd.xlane.f32.xlu0 %v259_v30  ;;  %v256_v31 = vmul.f32 %v338_v14, %v252_v28 }
 0x2b9   :  { %v260_v32 = vmul.f32 %v256_v31, %v256_v31 }
 0x2bb   :  { %267 = vadd.xlane.f32.xlu1 %v260_v32 }
 0x33c   :  { %v262_v33 = vpop.xlane.xlu0 %261 }
 0x33d   :  { %v269_v34 = vmul.f32 0.03125, %v262_v33 }
 0x33f   :  { %v273_v35 = vadd.f32 1e-05, %v269_v34 }
 0x340   :  { %v264_v36 = vpop.xlane.xlu1 %263  ;;  %v266_v37 = vpop.xlane.xlu0 %265 }
 0x341   :  { %379 = vrsqrt.f32 %v273_v35  ;;  %v270_v38 = vmul.f32 0.03125, %v264_v36  ;;  %v271_v39 = vmul.f32 0.03125, %v266_v37 }
 0x343   :  { %v274_v40 = vadd.f32 1e-05, %v270_v38  ;;  %v275_v41 = vadd.f32 1e-05, %v271_v39 }
 0x344   :  { %v268_v42 = vpop.xlane.xlu1 %267 }
 0x345   :  { %381 = vrsqrt.f32 %v274_v40  ;;  %v272_v43 = vmul.f32 0.03125, %v268_v42 }
 0x346   :  { %383 = vrsqrt.f32 %v275_v41 }
 0x347   :  { %v276_v44 = vadd.f32 1e-05, %v272_v43 }
 0x349   :  { %385 = vrsqrt.f32 %v276_v44 }
 0x34e   :  { %v380_v45 = vpop.eup %379 }
 0x34f   :  { %v281_v47 = vmul.f32 %v380_v45, %v253_v20 }
 0x351   :  { %v292_v49 = vmul.f32 %v339_v46, %v281_v47 }
 0x352   :  { %v382_v50 = vpop.eup %381 }
 0x353   :  { %v384_v51 = vpop.eup %383  ;;  %v282_v52 = vmul.f32 %v382_v50, %v254_v26  ;;  %v303_v53 = vadd.f32 %v340_v48, %v292_v49 }
 0x354   :  { %v283_v54 = vmul.f32 %v384_v51, %v255_v27 }
 0x355   :  { %v293_v55 = vmul.f32 %v339_v46, %v282_v52  ;;  %307 = vst [vmem:[#allocation7] sm:$0xff] %v303_v53 }
 0x356   :  { %v386_v56 = vpop.eup %385  ;;  %v294_v57 = vmul.f32 %v339_v46, %v283_v54 }
 0x357   :  { %v284_v58 = vmul.f32 %v386_v56, %v256_v31  ;;  %v304_v59 = vadd.f32 %v340_v48, %v293_v55 }
 0x358   :  { %v305_v60 = vadd.f32 %v340_v48, %v294_v57 }
 0x359   :  { %v295_v61 = vmul.f32 %v339_v46, %v284_v58  ;;  %308 = vst [vmem:[#allocation7 + $0x8] sm:$0xff] %v304_v59 }
 0x35a   :  { %309 = vst [vmem:[#allocation7 + $0x10] sm:$0xff] %v305_v60 }
 0x35b   :  { %v306_v62 = vadd.f32 %v340_v48, %v295_v61 }
 0x35d   :  { %310 = vst [vmem:[#allocation7 + $0x18] sm:$0xff] %v306_v62 }
 0x35e   :  { %438 = shalt.err (!%p435_p0)
}
 0x35f   :  { %322 = dma.vmem_to_hbm [thread:$0]  %s317_s5, 512, %s548_s7, [#allocation4], %s454_s27, %s454_s27, %s455_s28  }
 0x360   :  { %451 = dma.done.wait [#allocation4], 512  }
 0x361   :  { %452 = vsyncadd [#allocation4], 4294966784 }
 0x362   :  { %326 = vsyncpa [#allocation3], 1 }
 0x363   :  { %327 = vsyncpa [#allocation6], 1 }
 0x364   :  { %328 = vsyncpa [#allocation4], 1 }

</bundles_post_ra>
